<compile_context>
chip_gen: v7x
topology: tpu7x:2x2x1
jax: 0.10.0
libtpu: 0.0.40
codegen_flags: <defaults>
</compile_context>

<pallas_src>
import functools

import jax
import jax.numpy as jnp
import numpy as np
from jax.experimental import pallas as pl
from jax.experimental.pallas import tpu as pltpu


# ----------------------------------------------------------------------------
# Pallas kernel: hoisted input projection + unrolled LSTM recurrence + head
# ----------------------------------------------------------------------------
def lstm_classifier_kernel(
    x_ref,      # (T*BP, KP)  time-major, batch padded to BP=8 sublanes,
                #             columns = [x (D) | 1.0 | zero pad], fp32
    wgx_ref,    # (KP, 8H)    rows = [BN1-scaled W_ih_fwd|bwd ; fused bias ; 0], bf16
    whh_ref,    # (H, 4H)     forward-direction hidden weights (pre-transposed), bf16
    wfcf_ref,   # (H, OP)     BN2-folded fc rows for h_fwd, lane-padded to OP=128, bf16
    wfcb_ref,   # (H, OP)     BN2-folded fc rows for h_bwd, lane-padded, bf16
    bfc_ref,    # (1, OP)     BN2-folded fc bias, lane-padded, fp32
    out_ref,    # (BP, OP)    lane-dense output slab; real (B, O) sliced outside
    *,
    T: int, BP: int, H: int,
):
    # ---- one wide MXU matmul: x-contribution of every gate, all timesteps,
    #      both directions; the fused gate bias is picked up by the constant-1
    #      column (bf16 operands, f32 accumulation) ----
    gates_x = jnp.dot(x_ref[...].astype(jnp.bfloat16), wgx_ref[...],
                      preferred_element_type=jnp.float32)            # (T*BP, 8H)

    whh = whh_ref[...]                                                # (H, 4H) bf16

    # ---- forward recurrence, fully unrolled; every slice is an aligned
    #      (8, 128) vreg block (BP = 8, 4H = 128) ----
    h = jnp.zeros((BP, H), jnp.float32)
    c = jnp.zeros((BP, H), jnp.float32)
    for t in range(T):
        g = (gates_x[t * BP:(t + 1) * BP, 0:4 * H]
             + jnp.dot(h.astype(jnp.bfloat16), whh,
                       preferred_element_type=jnp.float32))          # (BP, 4H)
        # full-slab activations, then cheap slices (PyTorch gate order i,f,g,o);
        # elementwise/state math kept in f32 (v5e VPU/EUP have no bf16)
        sig = jax.nn.sigmoid(g)
        th = jnp.tanh(g)
        i_g = sig[:, 0 * H:1 * H]
        f_g = sig[:, 1 * H:2 * H]
        g_g = th[:, 2 * H:3 * H]
        o_g = sig[:, 3 * H:4 * H]
        c = f_g * c + i_g * g_g
        h = o_g * jnp.tanh(c)

    # ---- backward direction: output at the LAST timestep is its FIRST step
    #      from a zero state, so it is a pure function of the precomputed
    #      gates at t = T-1 (no hidden matmul, no f*c term) ----
    gb = gates_x[(T - 1) * BP:T * BP, 4 * H:8 * H]                    # (BP, 4H)
    sigb = jax.nn.sigmoid(gb)
    thb = jnp.tanh(gb)
    cb = sigb[:, 0 * H:1 * H] * thb[:, 2 * H:3 * H]
    hb = sigb[:, 3 * H:4 * H] * jnp.tanh(cb)

    # ---- classifier head: BN2 folded into the split, lane-padded fc weight;
    #      summing two small matmuls avoids a cross-lane concat of h_fwd/h_bwd;
    #      the (BP, OP) = (8, 128) store is a whole-vreg unmasked vst ----
    out_ref[...] = (jnp.dot(h.astype(jnp.bfloat16), wfcf_ref[...],
                            preferred_element_type=jnp.float32)
                    + jnp.dot(hb.astype(jnp.bfloat16), wfcb_ref[...],
                              preferred_element_type=jnp.float32)
                    + bfc_ref[...])


# ----------------------------------------------------------------------------
# Wrapper: BN folding + bias folding + padding/layout glue + pallas_call
# ----------------------------------------------------------------------------
@jax.jit
def lstm_classifier_forward(x, params):
    # x: (B, T, D), batch-first like PyTorch `batch_first=True`
    x = x.astype(jnp.float32)                     # x.float()
    B, T, D = x.shape
    H = params["w_hh_f"].shape[0]
    O = params["w_fc"].shape[1]
    eps = 1e-5

    BP = -(-B // 8) * 8                           # batch padded to sublane tile (8)
    KP = -(-(D + 1) // 8) * 8                     # D + bias column, sublane-aligned
    OP = -(-O // 128) * 128                       # lane-dense output width

    # ---- fold input BatchNorm1d (eval mode) into the input projection, and
    #      fold the fused gate bias (b_ih + b_hh + BN shift) into an extra
    #      weight row picked up by the constant-1 column of x ----
    n1 = params["norm1"]                          # rows: gamma, beta, mean, var
    s1 = n1[0] * jax.lax.rsqrt(n1[3] + eps)       # (D,)
    shift1 = n1[1] - n1[2] * s1                   # (D,)
    w_ih_cat = jnp.concatenate([params["w_ih_f"], params["w_ih_b"]], axis=1)   # (D, 8H)
    b_cat = jnp.concatenate([params["b_f"], params["b_b"]], axis=1)            # (1, 8H)
    b_gx = b_cat + shift1 @ w_ih_cat              # (1, 8H)
    w_gx_aug = jnp.concatenate(
        [w_ih_cat * s1[:, None],                  # (D, 8H)   BN1-scaled weights
         b_gx,                                    # (1, 8H)   fused bias row
         jnp.zeros((KP - D - 1, 8 * H), jnp.float32)],
        axis=0).astype(jnp.bfloat16)              # (KP, 8H) = (24, 256)

    # ---- fold output BatchNorm1d (eval mode) into the fc head, split rows,
    #      pad output lanes to OP ----
    n2 = params["norm2"]
    s2 = n2[0] * jax.lax.rsqrt(n2[3] + eps)       # (2H,)
    shift2 = n2[1] - n2[2] * s2                   # (2H,)
    w_fc = params["w_fc"] * s2[:, None]           # (2H, O)
    b_fc = params["b_fc"] + shift2 @ params["w_fc"]       # (1, O)
    w_fc_p = jnp.pad(w_fc, ((0, 0), (0, OP - O)))         # (2H, OP)
    b_fc_p = jnp.pad(b_fc, ((0, 0), (0, OP - O)))         # (1, OP) fp32
    w_fc_f = w_fc_p[:H].astype(jnp.bfloat16)      # (H, OP)  pairs with h_fwd
    w_fc_b = w_fc_p[H:].astype(jnp.bfloat16)      # (H, OP)  pairs with h_bwd

    whh = params["w_hh_f"].astype(jnp.bfloat16)   # (H, 4H)

    # ---- time-major, batch zero-padded to BP sublanes, constant-1 bias
    #      column, zero-padded to KP lanes: (T*BP, KP) ----
    x_tm = jnp.transpose(x, (1, 0, 2))                          # (T, B, D)
    x_tm = jnp.pad(x_tm, ((0, 0), (0, BP - B), (0, 0)))         # (T, BP, D)
    x_flat = x_tm.reshape(T * BP, D)
    x_aug = jnp.concatenate(
        [x_flat,
         jnp.ones((T * BP, 1), jnp.float32),
         jnp.zeros((T * BP, KP - D - 1), jnp.float32)], axis=1)  # (T*BP, KP)

    vmem = pl.BlockSpec(memory_space=pltpu.MemorySpace.VMEM)
    kernel = functools.partial(lstm_classifier_kernel, T=T, BP=BP, H=H)
    out_pad = pl.pallas_call(
        kernel,
        out_shape=jax.ShapeDtypeStruct((BP, OP), jnp.float32),
        in_specs=[vmem] * 6,
        out_specs=vmem,
    )(x_aug, w_gx_aug, whh, w_fc_f, w_fc_b, b_fc_p)
    return out_pad[:B, :O]


# ----------------------------------------------------------------------------
# Pure numpy reference (unfolded math, fp32) for a correctness guard
# ----------------------------------------------------------------------------
def reference_forward(x, p):
    eps = np.float32(1e-5)
    x = np.asarray(x, np.float32)                 # (B, T, D)
    n1 = np.asarray(p["norm1"], np.float32)
    xn = (x - n1[2]) / np.sqrt(n1[3] + eps) * n1[0] + n1[1]

    def sigmoid(z):
        return 1.0 / (1.0 + np.exp(-z))

    def cell(xt, h, c, wih, whh, b, H):
        gates = xt @ wih + h @ whh + b
        i = sigmoid(gates[:, 0 * H:1 * H])
        f = sigmoid(gates[:, 1 * H:2 * H])
        g = np.tanh(gates[:, 2 * H:3 * H])
        o = sigmoid(gates[:, 3 * H:4 * H])
        c = f * c + i * g
        h = o * np.tanh(c)
        return h, c

    B, T, D = x.shape
    H = np.asarray(p["w_hh_f"]).shape[0]
    h = np.zeros((B, H), np.float32)
    c = np.zeros((B, H), np.float32)
    for t in range(T):
        h, c = cell(xn[:, t, :], h, c,
                    np.asarray(p["w_ih_f"]), np.asarray(p["w_hh_f"]),
                    np.asarray(p["b_f"]), H)
    hb, _ = cell(xn[:, T - 1, :], np.zeros((B, H), np.float32),
                 np.zeros((B, H), np.float32),
                 np.asarray(p["w_ih_b"]), np.asarray(p["w_hh_b"]),
                 np.asarray(p["b_b"]), H)
    hcat = np.concatenate([h, hb], axis=-1)

    n2 = np.asarray(p["norm2"], np.float32)
    hbn = (hcat - n2[2]) / np.sqrt(n2[3] + eps) * n2[0] + n2[1]
    return hbn @ np.asarray(p["w_fc"]) + np.asarray(p["b_fc"])


# ----------------------------------------------------------------------------
# Deterministic parameter construction (module __init__ gives the shapes)
# ----------------------------------------------------------------------------
def make_params(key, input_dim, hidden_dim, output_dim):
    D, H, O = input_dim, hidden_dim, output_dim
    ks = jax.random.split(key, 12)

    def xavier(k, shape):
        fan_in, fan_out = shape
        lim = (6.0 / (fan_in + fan_out)) ** 0.5
        return jax.random.uniform(k, shape, jnp.float32, -lim, lim)

    def bn_pack(k, n):
        k1, k2, k3, k4 = jax.random.split(k, 4)
        gamma = 1.0 + 0.1 * jax.random.normal(k1, (n,), jnp.float32)
        beta = 0.1 * jax.random.normal(k2, (n,), jnp.float32)
        mean = 0.1 * jax.random.normal(k3, (n,), jnp.float32)
        var = 0.5 + jnp.abs(jax.random.normal(k4, (n,), jnp.float32))
        return jnp.stack([gamma, beta, mean, var], axis=0)     # (4, n)

    params = {
        "norm1": bn_pack(ks[0], D),
        # weight_ih: xavier_uniform; stored pre-transposed as (D, 4H)
        "w_ih_f": xavier(ks[1], (D, 4 * H)),
        "w_ih_b": xavier(ks[2], (D, 4 * H)),
        # weight_hh: scaled normal stand-in for orthogonal, (H, 4H)
        "w_hh_f": 0.3 * jax.random.normal(ks[3], (H, 4 * H), jnp.float32),
        "w_hh_b": 0.3 * jax.random.normal(ks[4], (H, 4 * H), jnp.float32),
        # all LSTM / fc biases initialized to 0 (matches init_weights);
        # b_f/b_b hold the combined (b_ih + b_hh) per direction
        "b_f": jnp.zeros((1, 4 * H), jnp.float32),
        "b_b": jnp.zeros((1, 4 * H), jnp.float32),
        "norm2": bn_pack(ks[5], 2 * H),
        "w_fc": xavier(ks[6], (2 * H, O)),
        "b_fc": jnp.zeros((1, O), jnp.float32),
    }
    return params


if __name__ == "__main__":
    # Small shapes consistent with the module's forward:
    #   batch=4, seq_len=8, input_dim=16, hidden_dim=32, bidirectional, output_dim=8
    B, T, D, H, O = 4, 8, 16, 32, 8

    key = jax.random.PRNGKey(0)
    k_x, k_p, k_b1, k_b2 = jax.random.split(key, 4)
    x = jax.random.normal(k_x, (B, T, D), jnp.float32)
    params = make_params(k_p, D, H, O)

    # bf16 MXU operands (f32 accumulation) => looser tolerance vs exact-f32 ref.
    TOL = 2e-2

    # Case 1: module-default parameters (zero biases, per init_weights).
    out = lstm_classifier_forward(x, params)
    out = jax.block_until_ready(out)
    ref = reference_forward(np.asarray(x), {k: np.asarray(v) for k, v in params.items()})
    np.testing.assert_allclose(np.asarray(out), ref, atol=TOL, rtol=TOL)
    assert out.shape == (B, O) and out.dtype == jnp.float32

    # Case 2: nonzero gate biases, to exercise the fused-bias fold
    # (review correctness concern: the zero-bias test cannot detect a missing
    # bias term in the folded projection).
    params_b = dict(params)
    params_b["b_f"] = 0.2 * jax.random.normal(k_b1, (1, 4 * H), jnp.float32)
    params_b["b_b"] = 0.2 * jax.random.normal(k_b2, (1, 4 * H), jnp.float32)
    out_b = lstm_classifier_forward(x, params_b)
    out_b = jax.block_until_ready(out_b)
    ref_b = reference_forward(np.asarray(x), {k: np.asarray(v) for k, v in params_b.items()})
    np.testing.assert_allclose(np.asarray(out_b), ref_b, atol=TOL, rtol=TOL)

    print("KERNEL_OK")
</pallas_src>

<mosaic_0001>
module attributes {stable_mosaic.version = 11 : i64} {
  func.func @lstm_classifier_kernel(%arg0: memref<64x24xf32, #tpu.memory_space<vmem>>, %arg1: memref<24x256xbf16, #tpu.memory_space<vmem>>, %arg2: memref<32x128xbf16, #tpu.memory_space<vmem>>, %arg3: memref<32x128xbf16, #tpu.memory_space<vmem>>, %arg4: memref<32x128xbf16, #tpu.memory_space<vmem>>, %arg5: memref<1x128xf32, #tpu.memory_space<vmem>>, %arg6: memref<8x128xf32, #tpu.memory_space<vmem>>) attributes {dimension_semantics = [], scalar_prefetch = 0 : i64, scratch_operands = 0 : i64, tpu.core_type = #tpu.core_type<tc>} {
    %c0 = arith.constant 0 : index
    %c0_0 = arith.constant 0 : index
    %0 = vector.load %arg0[%c0, %c0_0] : memref<64x24xf32, #tpu.memory_space<vmem>>, vector<64x24xf32>
    %1 = arith.truncf %0 : vector<64x24xf32> to vector<64x24xbf16>
    %c0_1 = arith.constant 0 : index
    %c0_2 = arith.constant 0 : index
    %2 = vector.load %arg1[%c0_1, %c0_2] : memref<24x256xbf16, #tpu.memory_space<vmem>>, vector<24x256xbf16>
    %cst = arith.constant dense<0.000000e+00> : vector<64x256xf32>
    %3 = tpu.matmul %1, %2, %cst {dimension_numbers = #tpu.dot_dimension_numbers<[1], [0], [0], [1], [0, 0, 1, 1], [], []>} : vector<64x24xbf16>, vector<24x256xbf16>, vector<64x256xf32> -> vector<64x256xf32>
    %c0_3 = arith.constant 0 : index
    %c0_4 = arith.constant 0 : index
    %4 = vector.load %arg2[%c0_3, %c0_4] : memref<32x128xbf16, #tpu.memory_space<vmem>>, vector<32x128xbf16>
    %cst_5 = arith.constant 0.000000e+00 : f32
    %5 = vector.broadcast %cst_5 : f32 to vector<8x32xf32>
    %cst_6 = arith.constant 0.000000e+00 : f32
    %6 = vector.broadcast %cst_6 : f32 to vector<8x32xf32>
    %7 = vector.extract_strided_slice %3 {offsets = [0, 0], sizes = [8, 128], strides = [1, 1]} : vector<64x256xf32> to vector<8x128xf32>
    %8 = arith.truncf %5 : vector<8x32xf32> to vector<8x32xbf16>
    %cst_7 = arith.constant dense<0.000000e+00> : vector<8x128xf32>
    %9 = tpu.matmul %8, %4, %cst_7 {dimension_numbers = #tpu.dot_dimension_numbers<[1], [0], [0], [1], [0, 0, 1, 1], [], []>} : vector<8x32xbf16>, vector<32x128xbf16>, vector<8x128xf32> -> vector<8x128xf32>
    %10 = arith.addf %7, %9 : vector<8x128xf32>
    %11 = arith.negf %10 : vector<8x128xf32>
    %12 = math.exp %11 : vector<8x128xf32>
    %cst_8 = arith.constant 1.000000e+00 : f32
    %13 = vector.broadcast %cst_8 : f32 to vector<8x128xf32>
    %14 = arith.addf %13, %12 : vector<8x128xf32>
    %15 = arith.divf %13, %14 : vector<8x128xf32>
    %16 = math.tanh %10 : vector<8x128xf32>
    %17 = vector.extract_strided_slice %15 {offsets = [0, 0], sizes = [8, 32], strides = [1, 1]} : vector<8x128xf32> to vector<8x32xf32>
    %18 = vector.extract_strided_slice %15 {offsets = [0, 32], sizes = [8, 32], strides = [1, 1]} : vector<8x128xf32> to vector<8x32xf32>
    %19 = vector.extract_strided_slice %16 {offsets = [0, 64], sizes = [8, 32], strides = [1, 1]} : vector<8x128xf32> to vector<8x32xf32>
    %20 = vector.extract_strided_slice %15 {offsets = [0, 96], sizes = [8, 32], strides = [1, 1]} : vector<8x128xf32> to vector<8x32xf32>
    %21 = arith.mulf %18, %6 : vector<8x32xf32>
    %22 = arith.mulf %17, %19 : vector<8x32xf32>
    %23 = arith.addf %21, %22 : vector<8x32xf32>
    %24 = math.tanh %23 : vector<8x32xf32>
    %25 = arith.mulf %20, %24 : vector<8x32xf32>
    %26 = vector.extract_strided_slice %3 {offsets = [8, 0], sizes = [8, 128], strides = [1, 1]} : vector<64x256xf32> to vector<8x128xf32>
    %27 = arith.truncf %25 : vector<8x32xf32> to vector<8x32xbf16>
    %cst_9 = arith.constant dense<0.000000e+00> : vector<8x128xf32>
    %28 = tpu.matmul %27, %4, %cst_9 {dimension_numbers = #tpu.dot_dimension_numbers<[1], [0], [0], [1], [0, 0, 1, 1], [], []>} : vector<8x32xbf16>, vector<32x128xbf16>, vector<8x128xf32> -> vector<8x128xf32>
    %29 = arith.addf %26, %28 : vector<8x128xf32>
    %30 = arith.negf %29 : vector<8x128xf32>
    %31 = math.exp %30 : vector<8x128xf32>
    %cst_10 = arith.constant 1.000000e+00 : f32
    %32 = vector.broadcast %cst_10 : f32 to vector<8x128xf32>
    %33 = arith.addf %32, %31 : vector<8x128xf32>
    %34 = arith.divf %32, %33 : vector<8x128xf32>
    %35 = math.tanh %29 : vector<8x128xf32>
    %36 = vector.extract_strided_slice %34 {offsets = [0, 0], sizes = [8, 32], strides = [1, 1]} : vector<8x128xf32> to vector<8x32xf32>
    %37 = vector.extract_strided_slice %34 {offsets = [0, 32], sizes = [8, 32], strides = [1, 1]} : vector<8x128xf32> to vector<8x32xf32>
    %38 = vector.extract_strided_slice %35 {offsets = [0, 64], sizes = [8, 32], strides = [1, 1]} : vector<8x128xf32> to vector<8x32xf32>
    %39 = vector.extract_strided_slice %34 {offsets = [0, 96], sizes = [8, 32], strides = [1, 1]} : vector<8x128xf32> to vector<8x32xf32>
    %40 = arith.mulf %37, %23 : vector<8x32xf32>
    %41 = arith.mulf %36, %38 : vector<8x32xf32>
    %42 = arith.addf %40, %41 : vector<8x32xf32>
    %43 = math.tanh %42 : vector<8x32xf32>
    %44 = arith.mulf %39, %43 : vector<8x32xf32>
    %45 = vector.extract_strided_slice %3 {offsets = [16, 0], sizes = [8, 128], strides = [1, 1]} : vector<64x256xf32> to vector<8x128xf32>
    %46 = arith.truncf %44 : vector<8x32xf32> to vector<8x32xbf16>
    %cst_11 = arith.constant dense<0.000000e+00> : vector<8x128xf32>
    %47 = tpu.matmul %46, %4, %cst_11 {dimension_numbers = #tpu.dot_dimension_numbers<[1], [0], [0], [1], [0, 0, 1, 1], [], []>} : vector<8x32xbf16>, vector<32x128xbf16>, vector<8x128xf32> -> vector<8x128xf32>
    %48 = arith.addf %45, %47 : vector<8x128xf32>
    %49 = arith.negf %48 : vector<8x128xf32>
    %50 = math.exp %49 : vector<8x128xf32>
    %cst_12 = arith.constant 1.000000e+00 : f32
    %51 = vector.broadcast %cst_12 : f32 to vector<8x128xf32>
    %52 = arith.addf %51, %50 : vector<8x128xf32>
    %53 = arith.divf %51, %52 : vector<8x128xf32>
    %54 = math.tanh %48 : vector<8x128xf32>
    %55 = vector.extract_strided_slice %53 {offsets = [0, 0], sizes = [8, 32], strides = [1, 1]} : vector<8x128xf32> to vector<8x32xf32>
    %56 = vector.extract_strided_slice %53 {offsets = [0, 32], sizes = [8, 32], strides = [1, 1]} : vector<8x128xf32> to vector<8x32xf32>
    %57 = vector.extract_strided_slice %54 {offsets = [0, 64], sizes = [8, 32], strides = [1, 1]} : vector<8x128xf32> to vector<8x32xf32>
    %58 = vector.extract_strided_slice %53 {offsets = [0, 96], sizes = [8, 32], strides = [1, 1]} : vector<8x128xf32> to vector<8x32xf32>
    %59 = arith.mulf %56, %42 : vector<8x32xf32>
    %60 = arith.mulf %55, %57 : vector<8x32xf32>
    %61 = arith.addf %59, %60 : vector<8x32xf32>
    %62 = math.tanh %61 : vector<8x32xf32>
    %63 = arith.mulf %58, %62 : vector<8x32xf32>
    %64 = vector.extract_strided_slice %3 {offsets = [24, 0], sizes = [8, 128], strides = [1, 1]} : vector<64x256xf32> to vector<8x128xf32>
    %65 = arith.truncf %63 : vector<8x32xf32> to vector<8x32xbf16>
    %cst_13 = arith.constant dense<0.000000e+00> : vector<8x128xf32>
    %66 = tpu.matmul %65, %4, %cst_13 {dimension_numbers = #tpu.dot_dimension_numbers<[1], [0], [0], [1], [0, 0, 1, 1], [], []>} : vector<8x32xbf16>, vector<32x128xbf16>, vector<8x128xf32> -> vector<8x128xf32>
    %67 = arith.addf %64, %66 : vector<8x128xf32>
    %68 = arith.negf %67 : vector<8x128xf32>
    %69 = math.exp %68 : vector<8x128xf32>
    %cst_14 = arith.constant 1.000000e+00 : f32
    %70 = vector.broadcast %cst_14 : f32 to vector<8x128xf32>
    %71 = arith.addf %70, %69 : vector<8x128xf32>
    %72 = arith.divf %70, %71 : vector<8x128xf32>
    %73 = math.tanh %67 : vector<8x128xf32>
    %74 = vector.extract_strided_slice %72 {offsets = [0, 0], sizes = [8, 32], strides = [1, 1]} : vector<8x128xf32> to vector<8x32xf32>
    %75 = vector.extract_strided_slice %72 {offsets = [0, 32], sizes = [8, 32], strides = [1, 1]} : vector<8x128xf32> to vector<8x32xf32>
    %76 = vector.extract_strided_slice %73 {offsets = [0, 64], sizes = [8, 32], strides = [1, 1]} : vector<8x128xf32> to vector<8x32xf32>
    %77 = vector.extract_strided_slice %72 {offsets = [0, 96], sizes = [8, 32], strides = [1, 1]} : vector<8x128xf32> to vector<8x32xf32>
    %78 = arith.mulf %75, %61 : vector<8x32xf32>
    %79 = arith.mulf %74, %76 : vector<8x32xf32>
    %80 = arith.addf %78, %79 : vector<8x32xf32>
    %81 = math.tanh %80 : vector<8x32xf32>
    %82 = arith.mulf %77, %81 : vector<8x32xf32>
    %83 = vector.extract_strided_slice %3 {offsets = [32, 0], sizes = [8, 128], strides = [1, 1]} : vector<64x256xf32> to vector<8x128xf32>
    %84 = arith.truncf %82 : vector<8x32xf32> to vector<8x32xbf16>
    %cst_15 = arith.constant dense<0.000000e+00> : vector<8x128xf32>
    %85 = tpu.matmul %84, %4, %cst_15 {dimension_numbers = #tpu.dot_dimension_numbers<[1], [0], [0], [1], [0, 0, 1, 1], [], []>} : vector<8x32xbf16>, vector<32x128xbf16>, vector<8x128xf32> -> vector<8x128xf32>
    %86 = arith.addf %83, %85 : vector<8x128xf32>
    %87 = arith.negf %86 : vector<8x128xf32>
    %88 = math.exp %87 : vector<8x128xf32>
    %cst_16 = arith.constant 1.000000e+00 : f32
    %89 = vector.broadcast %cst_16 : f32 to vector<8x128xf32>
    %90 = arith.addf %89, %88 : vector<8x128xf32>
    %91 = arith.divf %89, %90 : vector<8x128xf32>
    %92 = math.tanh %86 : vector<8x128xf32>
    %93 = vector.extract_strided_slice %91 {offsets = [0, 0], sizes = [8, 32], strides = [1, 1]} : vector<8x128xf32> to vector<8x32xf32>
    %94 = vector.extract_strided_slice %91 {offsets = [0, 32], sizes = [8, 32], strides = [1, 1]} : vector<8x128xf32> to vector<8x32xf32>
    %95 = vector.extract_strided_slice %92 {offsets = [0, 64], sizes = [8, 32], strides = [1, 1]} : vector<8x128xf32> to vector<8x32xf32>
    %96 = vector.extract_strided_slice %91 {offsets = [0, 96], sizes = [8, 32], strides = [1, 1]} : vector<8x128xf32> to vector<8x32xf32>
    %97 = arith.mulf %94, %80 : vector<8x32xf32>
    %98 = arith.mulf %93, %95 : vector<8x32xf32>
    %99 = arith.addf %97, %98 : vector<8x32xf32>
    %100 = math.tanh %99 : vector<8x32xf32>
    %101 = arith.mulf %96, %100 : vector<8x32xf32>
    %102 = vector.extract_strided_slice %3 {offsets = [40, 0], sizes = [8, 128], strides = [1, 1]} : vector<64x256xf32> to vector<8x128xf32>
    %103 = arith.truncf %101 : vector<8x32xf32> to vector<8x32xbf16>
    %cst_17 = arith.constant dense<0.000000e+00> : vector<8x128xf32>
    %104 = tpu.matmul %103, %4, %cst_17 {dimension_numbers = #tpu.dot_dimension_numbers<[1], [0], [0], [1], [0, 0, 1, 1], [], []>} : vector<8x32xbf16>, vector<32x128xbf16>, vector<8x128xf32> -> vector<8x128xf32>
    %105 = arith.addf %102, %104 : vector<8x128xf32>
    %106 = arith.negf %105 : vector<8x128xf32>
    %107 = math.exp %106 : vector<8x128xf32>
    %cst_18 = arith.constant 1.000000e+00 : f32
    %108 = vector.broadcast %cst_18 : f32 to vector<8x128xf32>
    %109 = arith.addf %108, %107 : vector<8x128xf32>
    %110 = arith.divf %108, %109 : vector<8x128xf32>
    %111 = math.tanh %105 : vector<8x128xf32>
    %112 = vector.extract_strided_slice %110 {offsets = [0, 0], sizes = [8, 32], strides = [1, 1]} : vector<8x128xf32> to vector<8x32xf32>
    %113 = vector.extract_strided_slice %110 {offsets = [0, 32], sizes = [8, 32], strides = [1, 1]} : vector<8x128xf32> to vector<8x32xf32>
    %114 = vector.extract_strided_slice %111 {offsets = [0, 64], sizes = [8, 32], strides = [1, 1]} : vector<8x128xf32> to vector<8x32xf32>
    %115 = vector.extract_strided_slice %110 {offsets = [0, 96], sizes = [8, 32], strides = [1, 1]} : vector<8x128xf32> to vector<8x32xf32>
    %116 = arith.mulf %113, %99 : vector<8x32xf32>
    %117 = arith.mulf %112, %114 : vector<8x32xf32>
    %118 = arith.addf %116, %117 : vector<8x32xf32>
    %119 = math.tanh %118 : vector<8x32xf32>
    %120 = arith.mulf %115, %119 : vector<8x32xf32>
    %121 = vector.extract_strided_slice %3 {offsets = [48, 0], sizes = [8, 128], strides = [1, 1]} : vector<64x256xf32> to vector<8x128xf32>
    %122 = arith.truncf %120 : vector<8x32xf32> to vector<8x32xbf16>
    %cst_19 = arith.constant dense<0.000000e+00> : vector<8x128xf32>
    %123 = tpu.matmul %122, %4, %cst_19 {dimension_numbers = #tpu.dot_dimension_numbers<[1], [0], [0], [1], [0, 0, 1, 1], [], []>} : vector<8x32xbf16>, vector<32x128xbf16>, vector<8x128xf32> -> vector<8x128xf32>
    %124 = arith.addf %121, %123 : vector<8x128xf32>
    %125 = arith.negf %124 : vector<8x128xf32>
    %126 = math.exp %125 : vector<8x128xf32>
    %cst_20 = arith.constant 1.000000e+00 : f32
    %127 = vector.broadcast %cst_20 : f32 to vector<8x128xf32>
    %128 = arith.addf %127, %126 : vector<8x128xf32>
    %129 = arith.divf %127, %128 : vector<8x128xf32>
    %130 = math.tanh %124 : vector<8x128xf32>
    %131 = vector.extract_strided_slice %129 {offsets = [0, 0], sizes = [8, 32], strides = [1, 1]} : vector<8x128xf32> to vector<8x32xf32>
    %132 = vector.extract_strided_slice %129 {offsets = [0, 32], sizes = [8, 32], strides = [1, 1]} : vector<8x128xf32> to vector<8x32xf32>
    %133 = vector.extract_strided_slice %130 {offsets = [0, 64], sizes = [8, 32], strides = [1, 1]} : vector<8x128xf32> to vector<8x32xf32>
    %134 = vector.extract_strided_slice %129 {offsets = [0, 96], sizes = [8, 32], strides = [1, 1]} : vector<8x128xf32> to vector<8x32xf32>
    %135 = arith.mulf %132, %118 : vector<8x32xf32>
    %136 = arith.mulf %131, %133 : vector<8x32xf32>
    %137 = arith.addf %135, %136 : vector<8x32xf32>
    %138 = math.tanh %137 : vector<8x32xf32>
    %139 = arith.mulf %134, %138 : vector<8x32xf32>
    %140 = vector.extract_strided_slice %3 {offsets = [56, 0], sizes = [8, 128], strides = [1, 1]} : vector<64x256xf32> to vector<8x128xf32>
    %141 = arith.truncf %139 : vector<8x32xf32> to vector<8x32xbf16>
    %cst_21 = arith.constant dense<0.000000e+00> : vector<8x128xf32>
    %142 = tpu.matmul %141, %4, %cst_21 {dimension_numbers = #tpu.dot_dimension_numbers<[1], [0], [0], [1], [0, 0, 1, 1], [], []>} : vector<8x32xbf16>, vector<32x128xbf16>, vector<8x128xf32> -> vector<8x128xf32>
    %143 = arith.addf %140, %142 : vector<8x128xf32>
    %144 = arith.negf %143 : vector<8x128xf32>
    %145 = math.exp %144 : vector<8x128xf32>
    %cst_22 = arith.constant 1.000000e+00 : f32
    %146 = vector.broadcast %cst_22 : f32 to vector<8x128xf32>
    %147 = arith.addf %146, %145 : vector<8x128xf32>
    %148 = arith.divf %146, %147 : vector<8x128xf32>
    %149 = math.tanh %143 : vector<8x128xf32>
    %150 = vector.extract_strided_slice %148 {offsets = [0, 0], sizes = [8, 32], strides = [1, 1]} : vector<8x128xf32> to vector<8x32xf32>
    %151 = vector.extract_strided_slice %148 {offsets = [0, 32], sizes = [8, 32], strides = [1, 1]} : vector<8x128xf32> to vector<8x32xf32>
    %152 = vector.extract_strided_slice %149 {offsets = [0, 64], sizes = [8, 32], strides = [1, 1]} : vector<8x128xf32> to vector<8x32xf32>
    %153 = vector.extract_strided_slice %148 {offsets = [0, 96], sizes = [8, 32], strides = [1, 1]} : vector<8x128xf32> to vector<8x32xf32>
    %154 = arith.mulf %151, %137 : vector<8x32xf32>
    %155 = arith.mulf %150, %152 : vector<8x32xf32>
    %156 = arith.addf %154, %155 : vector<8x32xf32>
    %157 = math.tanh %156 : vector<8x32xf32>
    %158 = arith.mulf %153, %157 : vector<8x32xf32>
    %159 = vector.extract_strided_slice %3 {offsets = [56, 128], sizes = [8, 128], strides = [1, 1]} : vector<64x256xf32> to vector<8x128xf32>
    %160 = arith.negf %159 : vector<8x128xf32>
    %161 = math.exp %160 : vector<8x128xf32>
    %cst_23 = arith.constant 1.000000e+00 : f32
    %162 = vector.broadcast %cst_23 : f32 to vector<8x128xf32>
    %163 = arith.addf %162, %161 : vector<8x128xf32>
    %164 = arith.divf %162, %163 : vector<8x128xf32>
    %165 = math.tanh %159 : vector<8x128xf32>
    %166 = vector.extract_strided_slice %164 {offsets = [0, 0], sizes = [8, 32], strides = [1, 1]} : vector<8x128xf32> to vector<8x32xf32>
    %167 = vector.extract_strided_slice %165 {offsets = [0, 64], sizes = [8, 32], strides = [1, 1]} : vector<8x128xf32> to vector<8x32xf32>
    %168 = arith.mulf %166, %167 : vector<8x32xf32>
    %169 = vector.extract_strided_slice %164 {offsets = [0, 96], sizes = [8, 32], strides = [1, 1]} : vector<8x128xf32> to vector<8x32xf32>
    %170 = math.tanh %168 : vector<8x32xf32>
    %171 = arith.mulf %169, %170 : vector<8x32xf32>
    %172 = arith.truncf %158 : vector<8x32xf32> to vector<8x32xbf16>
    %c0_24 = arith.constant 0 : index
    %c0_25 = arith.constant 0 : index
    %173 = vector.load %arg3[%c0_24, %c0_25] : memref<32x128xbf16, #tpu.memory_space<vmem>>, vector<32x128xbf16>
    %cst_26 = arith.constant dense<0.000000e+00> : vector<8x128xf32>
    %174 = tpu.matmul %172, %173, %cst_26 {dimension_numbers = #tpu.dot_dimension_numbers<[1], [0], [0], [1], [0, 0, 1, 1], [], []>} : vector<8x32xbf16>, vector<32x128xbf16>, vector<8x128xf32> -> vector<8x128xf32>
    %175 = arith.truncf %171 : vector<8x32xf32> to vector<8x32xbf16>
    %c0_27 = arith.constant 0 : index
    %c0_28 = arith.constant 0 : index
    %176 = vector.load %arg4[%c0_27, %c0_28] : memref<32x128xbf16, #tpu.memory_space<vmem>>, vector<32x128xbf16>
    %cst_29 = arith.constant dense<0.000000e+00> : vector<8x128xf32>
    %177 = tpu.matmul %175, %176, %cst_29 {dimension_numbers = #tpu.dot_dimension_numbers<[1], [0], [0], [1], [0, 0, 1, 1], [], []>} : vector<8x32xbf16>, vector<32x128xbf16>, vector<8x128xf32> -> vector<8x128xf32>
    %178 = arith.addf %174, %177 : vector<8x128xf32>
    %c0_30 = arith.constant 0 : index
    %c0_31 = arith.constant 0 : index
    %179 = vector.load %arg5[%c0_30, %c0_31] : memref<1x128xf32, #tpu.memory_space<vmem>>, vector<1x128xf32>
    %180 = vector.broadcast %179 : vector<1x128xf32> to vector<8x128xf32>
    %181 = arith.addf %178, %180 : vector<8x128xf32>
    %c0_32 = arith.constant 0 : index
    %c0_33 = arith.constant 0 : index
    %182 = vector.load %arg6[%c0_32, %c0_33] : memref<8x128xf32, #tpu.memory_space<vmem>>, vector<8x128xf32>
    tpu.vector_store %arg6[%c0_32, %c0_33], %181 {strides = array<i32>} : memref<8x128xf32, #tpu.memory_space<vmem>>, vector<8x128xf32>,
    return
  }
}

</mosaic_0001>

<bundles_post_ra>
// kernel: lstm_classifier_forward.1
= control target key start
LH: loop header
LB: loop body
LE: loop exit
PB: predicated region body
PF: predicated region fallthrough
CT: control target
= control target key end

     0   :  { %v1119_v0 = vmov 0.0   ;;  %vm1120_vm0 = vmmov 0   ;;  %v1121_v5 = vmov 0   ;;  %vm67_vm1 = vcmask 1043456   ;;  %s1124_s24 = smov 96   ;;  %s1339_s1 = inlined_call_operand.vmem [shape: bf16[24,256], index: 1, kind: input, shape index: {}]   ;;  %s1340_s2 = inlined_call_operand.vmem [shape: bf16[32,128], index: 2, kind: input, shape index: {}]   ;;  %s1341_s0 = inlined_call_operand.vmem [shape: f32[64,24], index: 0, kind: input, shape index: {}]   ;;  %s1342_s4 = inlined_call_operand.vmem [shape: bf16[32,128], index: 4, kind: input, shape index: {}]   ;;  %s1343_s3 = inlined_call_operand.vmem [shape: bf16[32,128], index: 3, kind: input, shape index: {}]   ;;  %s1344_s5 = inlined_call_operand.vmem [shape: f32[1,128], index: 5, kind: input, shape index: {}]   ;;  %s1345_s6 = inlined_call_operand.vmem [shape: f32[8,128], index: 6, kind: output, shape index: {}]  }
   0x1   :  { %950 = vmatprep.subr.bf16.mxu1 %v1119_v0  ;;  %v38_v1 = vld [vmem:[%s1339_s1 + $0x10] sm:$0xff]  ;;  %954 = vmatprep.mubr.msk.bf16.mxu1 %vm1120_vm0, %v1119_v0  ;;  %v1036_v2 = vld [vmem:[%s1339_s1 + $0x4] ss:$8 sps:$4 sm:$0xff]   ;;  %v1040_v7 = vld [vmem:[%s1339_s1] ss:$8 sps:$4 sm:$0xff]   ;;  %vm54_vm2 = vcmask 195584  }
   0x2   :  { %v889_v3 = vcombine.high %v38_v1, %v38_v1  ;;  %v888_v4 = vcombine.low %v38_v1, %v38_v1  ;;  %106 = vmatprep.mubr.bf16.mxu0 %v1121_v5  ;;  %v1173_v6 = vld [vmem:[%s1340_s2] sm:$0xff]   ;;  %74 = vmatprep.subr.bf16.mxu0 %v1036_v2  ;;  %v1182_v8 = vld [vmem:[%s1340_s2 + $0x8] sm:$0xff]   ;;  %s1122_s1 = smov 64   ;;  %s1123_s2 = smov 32   ;;  %vm156_vm3 = vcmask 261120   ;;  %v26_v52 = vld [vmem:[%s1341_s0 + $0x10] sm:$0xff] }
   0x3   :  { %951 = vmatpush3.bf16.msra.mxu1 %v1173_v6  ;;  %75 = vmatpush1.bf16.msra.mxu0 %v1040_v7  ;;  %v24_v9 = vld [vmem:[%s1341_s0] sm:$0xff]  ;;  %v25_v10 = vld [vmem:[%s1341_s0 + $0x8] sm:$0xff]  ;;  %v27_v53 = vld [vmem:[%s1341_s0 + $0x18] sm:$0xff] }
   0x4   :  { %952 = vmatprep.subr.bf16.mxu1 %v1119_v0  ;;  %890 = vmatprep.subr.msk.bf16.mxu0 %vm67_vm1, %v889_v3  ;;  %v69_v11 = vsel %vm67_vm1, %v888_v4, 0  ;;  %v32_v12 = vpack.c.bf16 %v25_v10, %v24_v9  ;;  %v33_v54 = vpack.c.bf16 %v27_v53, %v26_v52 }
   0x7   :  { %953 = vmatpush3.bf16.msra.mxu1 %v1182_v8  ;;  %77 = vmatpush1.bf16.msra.mxu0 %v69_v11 }
   0x8   :  { %958 = vmatprep.subr.bf16.mxu1 %v1119_v0  ;;  %982 = vmatprep.subr.bf16.mxu0 %v1119_v0 }
   0xa   :  { %955 = vmatmul.mubr.bf16.vlgmr.msra.gmra.mrb[0].mxu1 %v1121_v5  ;;  %891 = vmatmul.mubr.msk.bf16.vlgmr.msra.gmra.mrb[0].mxu0 %vm54_vm2, %v32_v12 }
   0xb   :  { %959 = vmatpush3.bf16.msra.mxu1 %v1173_v6  ;;  %962 = vmatprep.mubr.msk.bf16.mxu1 %vm1120_vm0, %v1119_v0 }
   0xc   :  { %960 = vmatprep.subr.bf16.mxu1 %v1119_v0  ;;  %114 = vmatprep.mubr.bf16.mxu0 %v1121_v5 }
   0xd   :  { %983 = vmatpush3.bf16.msra.mxu0 %v1173_v6 }
   0xe   :  { %984 = vmatprep.subr.bf16.mxu0 %v1119_v0 }
   0xf   :  { %961 = vmatpush3.bf16.msra.mxu1 %v1182_v8 }
  0x10   :  { %966 = vmatprep.subr.bf16.mxu1 %v1119_v0 }
  0x11   :  { %985 = vmatpush3.bf16.msra.mxu0 %v1182_v8 }
  0x12   :  { %998 = vmatprep.subr.bf16.mxu0 %v1119_v0  ;;  %892 = vmatmul.mubr.msk.bf16.gmra.mrb[4].mxu0 %vm54_vm2, %v33_v54 }
  0x13   :  { %122 = vmatprep.mubr.bf16.mxu0 %v1121_v5 }
  0xdd   :  { %v194_v13 = vpop.f32.mrb[0].mxu1  ;;  %v108_v14 = vpop.f32.mrb[0].mxu0 }
  0xde   :  { %v200_v15 = vadd.f32 %v194_v13, %v108_v14  ;;  %v956_v16 = vpop.f32.mrb[1].mxu1  ;;  %v110_v17 = vpop.f32.mrb[1].mxu0 }
  0xdf   :  { %v197_v18 = vpop.f32.mrb[2].mxu1  ;;  %v111_v19 = vpop.f32.mrb[2].mxu0 }
  0xe0   :  { %1047 = vtanh.f32 %v200_v15  ;;  %v957_v20 = vpop.f32.mrb[3].mxu1  ;;  %v113_v21 = vpop.f32.mrb[3].mxu0  ;;  %v897_v23 = vmul.f32 -1.442695, %v200_v15 }
  0xe2   :  { %1049 = vpow2.f32 %v897_v23 }
  0xe5   :  { %v116_v59 = vpop.f32.mrb[4].mxu0 }
  0xe6   :  { %v118_v60 = vpop.f32.mrb[5].mxu0 }
  0xe7   :  { %v119_v61 = vpop.f32.mrb[6].mxu0 }
  0xe8   :  { %v121_v62 = vpop.f32.mrb[7].mxu0 }
  0xea   :  { %v1048_v22 = vpop.eup %1047 }
  0xeb   :  { %210 = vrot.lane.b32.xlu0 %v1048_v22, %s1122_s1 }
  0xec   :  { %v1050_v24 = vpop.eup %1049 }
  0xed   :  { %v204_v25 = vadd.f32 1.0, %v1050_v24 }
  0xef   :  { %1051 = vrcp.f32 %v204_v25 }
  0xf9   :  { %v1052_v26 = vpop.eup %1051 }
  0xfa   :  { %v208_v29 = vmul.f32 0.0, %v1052_v26 }
 0x15d   :  { %v211_v27 = vpop.permute.xlu0 %210 }
 0x15e   :  { %v213_v28 = vmul.f32 %v1052_v26, %v211_v27 }
 0x160   :  { %215 = vrot.lane.b32.xlu0 %v213_v28, %s1123_s2 }
 0x1d2   :  { %v216_v30 = vpop.permute.xlu0 %215 }
 0x1d3   :  { %v218_v31 = vadd.f32 %v216_v30, %v208_v29 }
 0x1d5   :  { %1053 = vtanh.f32 %v218_v31 }
 0x1df   :  { %v1054_v32 = vpop.eup %1053 }
 0x1e0   :  { %221 = vrot.lane.b32.xlu1 %v1054_v32, %s1122_s1 }
 0x252   :  { %v222_v33 = vpop.permute.xlu1 %221 }
 0x253   :  { %v224_v34 = vmul.f32 %v1052_v26, %v222_v33 }
 0x255   :  { %v225_v35 = vpack.c.bf16 %v224_v34, %v224_v34 }
 0x257   :  { %227 = vrot.lane.b32.xlu1 %v225_v35, %s1123_s2 }
 0x2c9   :  { %v228_v36 = vpop.permute.xlu1 %227 }
 0x2ca   :  { %963 = vmatmul.mubr.msk.bf16.vlgmr.msra.gmra.mrb[4].mxu1 %vm156_vm3, %v228_v36 }
 0x2cb   :  { %967 = vmatpush3.bf16.msra.mxu1 %v1173_v6  ;;  %970 = vmatprep.mubr.msk.bf16.mxu1 %vm1120_vm0, %v1119_v0 }
 0x2cc   :  { %968 = vmatprep.subr.bf16.mxu1 %v1119_v0 }
 0x2cf   :  { %969 = vmatpush3.bf16.msra.mxu1 %v1182_v8 }
 0x2d0   :  { %974 = vmatprep.subr.bf16.mxu1 %v1119_v0 }
 0x39d   :  { %v266_v37 = vpop.f32.mrb[4].mxu1 }
 0x39e   :  { %v272_v38 = vadd.f32 %v266_v37, %v111_v19  ;;  %v964_v39 = vpop.f32.mrb[5].mxu1 }
 0x39f   :  { %v269_v40 = vpop.f32.mrb[6].mxu1  ;;  %v28_v39 = vld [vmem:[%s1341_s0 + $0x20] sm:$0xff] }
 0x3a0   :  { %1055 = vtanh.f32 %v272_v38  ;;  %v965_v41 = vpop.f32.mrb[7].mxu1  ;;  %v899_v43 = vmul.f32 -1.442695, %v272_v38  ;;  %v29_v40 = vld [vmem:[%s1341_s0 + $0x28] sm:$0xff] }
 0x3a1   :  { %v34_v41 = vpack.c.bf16 %v29_v40, %v28_v39 }
 0x3a2   :  { %1057 = vpow2.f32 %v899_v43  ;;  %v31_v43 = vld [vmem:[%s1341_s0 + $0x38] sm:$0xff] }
 0x3a3   :  { %893 = vmatmul.mubr.msk.bf16.gmra.mrb[8].mxu0 %vm54_vm2, %v34_v41 }
 0x3a4   :  { %130 = vmatprep.mubr.bf16.mxu0 %v1121_v5 }
 0x3aa   :  { %v1056_v42 = vpop.eup %1055 }
 0x3ab   :  { %282 = vrot.lane.b32.xlu0 %v1056_v42, %s1122_s1  ;;  %v30_v42 = vld [vmem:[%s1341_s0 + $0x30] sm:$0xff] }
 0x3ac   :  { %v1058_v44 = vpop.eup %1057 }
 0x3ad   :  { %v276_v45 = vadd.f32 1.0, %v1058_v44  ;;  %v35_v44 = vpack.c.bf16 %v31_v43, %v30_v42 }
 0x3af   :  { %1059 = vrcp.f32 %v276_v45  ;;  %894 = vmatmul.mubr.msk.bf16.gmra.mrb[12].mxu0 %vm54_vm2, %v35_v44 }
 0x3b0   :  { %986 = vmatprep.mubr.msk.bf16.mxu0 %vm1120_vm0, %v1119_v0 }
 0x3b9   :  { %v1060_v46 = vpop.eup %1059 }
 0x3ba   :  { %v280_v49 = vmul.f32 %v1060_v46, %v218_v31 }
 0x41d   :  { %v283_v47 = vpop.permute.xlu0 %282 }
 0x41e   :  { %v285_v48 = vmul.f32 %v1060_v46, %v283_v47 }
 0x420   :  { %287 = vrot.lane.b32.xlu1 %v285_v48, %s1123_s2 }
 0x476   :  { %v124_v48 = vpop.f32.mrb[8].mxu0 }
 0x492   :  { %v288_v50 = vpop.permute.xlu1 %287 }
 0x493   :  { %v290_v51 = vadd.f32 %v288_v50, %v280_v49  ;;  %v126_v49 = vpop.f32.mrb[9].mxu0 }
 0x494   :  { %v127_v50 = vpop.f32.mrb[10].mxu0 }
 0x495   :  { %1061 = vtanh.f32 %v290_v51 }
 0x49f   :  { %v1062_v55 = vpop.eup %1061 }
 0x4a0   :  { %293 = vrot.lane.b32.xlu0 %v1062_v55, %s1122_s1 }
 0x512   :  { %v294_v56 = vpop.permute.xlu0 %293 }
 0x513   :  { %v296_v57 = vmul.f32 %v1060_v46, %v294_v56 }
 0x515   :  { %v297_v58 = vpack.c.bf16 %v296_v57, %v296_v57 }
 0x517   :  { %299 = vrot.lane.b32.xlu1 %v297_v58, %s1123_s2 }
 0x589   :  { %v300_v63 = vpop.permute.xlu1 %299 }
 0x58a   :  { %971 = vmatmul.mubr.msk.bf16.vlgmr.msra.gmra.mrb[8].mxu1 %vm156_vm3, %v300_v63 }
 0x58b   :  { %975 = vmatpush3.bf16.msra.mxu1 %v1173_v6  ;;  %978 = vmatprep.mubr.msk.bf16.mxu1 %vm1120_vm0, %v1119_v0 }
 0x58c   :  { %976 = vmatprep.subr.bf16.mxu1 %v1119_v0 }
 0x58f   :  { %977 = vmatpush3.bf16.msra.mxu1 %v1182_v8 }
 0x590   :  { %990 = vmatprep.subr.bf16.mxu1 %v1119_v0 }
 0x65d   :  { %v338_v1 = vpop.f32.mrb[8].mxu1 }
 0x65e   :  { %v344_v2 = vadd.f32 %v338_v1, %v116_v59  ;;  %v972_v3 = vpop.f32.mrb[9].mxu1 }
 0x65f   :  { %v341_v4 = vpop.f32.mrb[10].mxu1 }
 0x660   :  { %1063 = vtanh.f32 %v344_v2  ;;  %v973_v7 = vpop.f32.mrb[11].mxu1  ;;  %v901_v10 = vmul.f32 -1.442695, %v344_v2 }
 0x662   :  { %1065 = vpow2.f32 %v901_v10 }
 0x66a   :  { %v1064_v9 = vpop.eup %1063 }
 0x66b   :  { %354 = vrot.lane.b32.xlu0 %v1064_v9, %s1122_s1 }
 0x66c   :  { %v1066_v11 = vpop.eup %1065 }
 0x66d   :  { %v348_v12 = vadd.f32 1.0, %v1066_v11 }
 0x66f   :  { %1067 = vrcp.f32 %v348_v12 }
 0x679   :  { %v1068_v13 = vpop.eup %1067 }
 0x67a   :  { %v352_v16 = vmul.f32 %v1068_v13, %v290_v51  ;;  %v129_v51 = vpop.f32.mrb[11].mxu0 }
 0x67b   :  { %v1269_v52 = vpop.f32.mrb[12].mxu0 }
 0x67c   :  { %v134_v53 = vpop.f32.mrb[13].mxu0 }
 0x67d   :  { %v1271_v54 = vpop.f32.mrb[14].mxu0 }
 0x67e   :  { %v1273_v55 = vpop.f32.mrb[15].mxu0 }
 0x6dd   :  { %v355_v14 = vpop.permute.xlu0 %354 }
 0x6de   :  { %v357_v15 = vmul.f32 %v1068_v13, %v355_v14 }
 0x6e0   :  { %359 = vrot.lane.b32.xlu1 %v357_v15, %s1123_s2 }
 0x752   :  { %v360_v17 = vpop.permute.xlu1 %359 }
 0x753   :  { %v362_v18 = vadd.f32 %v360_v17, %v352_v16 }
 0x755   :  { %1069 = vtanh.f32 %v362_v18 }
 0x75f   :  { %v1070_v19 = vpop.eup %1069 }
 0x760   :  { %365 = vrot.lane.b32.xlu0 %v1070_v19, %s1122_s1 }
 0x7d2   :  { %v366_v20 = vpop.permute.xlu0 %365 }
 0x7d3   :  { %v368_v21 = vmul.f32 %v1068_v13, %v366_v20 }
 0x7d5   :  { %v369_v22 = vpack.c.bf16 %v368_v21, %v368_v21 }
 0x7d7   :  { %371 = vrot.lane.b32.xlu1 %v369_v22, %s1123_s2 }
 0x849   :  { %v372_v23 = vpop.permute.xlu1 %371 }
 0x84a   :  { %979 = vmatmul.mubr.msk.bf16.vlgmr.msra.gmra.mrb[12].mxu1 %vm156_vm3, %v372_v23 }
 0x84b   :  { %991 = vmatpush3.bf16.msra.mxu1 %v1173_v6  ;;  %994 = vmatprep.mubr.msk.bf16.mxu1 %vm1120_vm0, %v1119_v0 }
 0x84c   :  { %992 = vmatprep.subr.bf16.mxu1 %v1119_v0 }
 0x84f   :  { %993 = vmatpush3.bf16.msra.mxu1 %v1182_v8 }
 0x850   :  { %1006 = vmatprep.subr.bf16.mxu1 %v1119_v0 }
 0x91d   :  { %v410_v24 = vpop.f32.mrb[12].mxu1 }
 0x91e   :  { %v416_v25 = vadd.f32 %v410_v24, %v119_v61  ;;  %v980_v26 = vpop.f32.mrb[13].mxu1 }
 0x91f   :  { %v413_v27 = vpop.f32.mrb[14].mxu1 }
 0x920   :  { %1071 = vtanh.f32 %v416_v25  ;;  %v981_v28 = vpop.f32.mrb[15].mxu1  ;;  %v903_v30 = vmul.f32 -1.442695, %v416_v25 }
 0x922   :  { %1073 = vpow2.f32 %v903_v30 }
 0x92a   :  { %v1072_v29 = vpop.eup %1071 }
 0x92b   :  { %426 = vrot.lane.b32.xlu0 %v1072_v29, %s1122_s1 }
 0x92c   :  { %v1074_v31 = vpop.eup %1073 }
 0x92d   :  { %v420_v32 = vadd.f32 1.0, %v1074_v31 }
 0x92f   :  { %1075 = vrcp.f32 %v420_v32 }
 0x939   :  { %v1076_v33 = vpop.eup %1075 }
 0x93a   :  { %v424_v36 = vmul.f32 %v1076_v33, %v362_v18 }
 0x99d   :  { %v427_v34 = vpop.permute.xlu0 %426 }
 0x99e   :  { %v429_v35 = vmul.f32 %v1076_v33, %v427_v34 }
 0x9a0   :  { %431 = vrot.lane.b32.xlu1 %v429_v35, %s1123_s2 }
 0xa12   :  { %v432_v37 = vpop.permute.xlu1 %431 }
 0xa13   :  { %v434_v38 = vadd.f32 %v432_v37, %v424_v36 }
 0xa15   :  { %1077 = vtanh.f32 %v434_v38 }
 0xa1f   :  { %v1078_v45 = vpop.eup %1077 }
 0xa20   :  { %437 = vrot.lane.b32.xlu0 %v1078_v45, %s1122_s1 }
 0xa92   :  { %v438_v46 = vpop.permute.xlu0 %437 }
 0xa93   :  { %v440_v47 = vmul.f32 %v1076_v33, %v438_v46 }
 0xa95   :  { %v441_v5 = vpack.c.bf16 %v440_v47, %v440_v47 }
 0xa97   :  { %443 = vrot.lane.b32.xlu1 %v441_v5, %s1123_s2 }
 0xb09   :  { %v444_v56 = vpop.permute.xlu1 %443 }
 0xb0a   :  { %987 = vmatmul.mubr.msk.bf16.vlgmr.msra.gmra.mrb[16].mxu0 %vm156_vm3, %v444_v56 }
 0xb0b   :  { %999 = vmatpush3.bf16.msra.mxu0 %v1173_v6  ;;  %1002 = vmatprep.mubr.msk.bf16.mxu0 %vm1120_vm0, %v1119_v0 }
 0xb0c   :  { %1000 = vmatprep.subr.bf16.mxu0 %v1119_v0 }
 0xb0f   :  { %1001 = vmatpush3.bf16.msra.mxu0 %v1182_v8 }
 0xb10   :  { %1014 = vmatprep.subr.bf16.mxu0 %v1119_v0 }
 0xbdd   :  { %v482_v57 = vpop.f32.mrb[16].mxu0 }
 0xbde   :  { %v488_v58 = vadd.f32 %v482_v57, %v124_v48  ;;  %v988_v59 = vpop.f32.mrb[17].mxu0 }
 0xbdf   :  { %v485_v60 = vpop.f32.mrb[18].mxu0 }
 0xbe0   :  { %1079 = vtanh.f32 %v488_v58  ;;  %v989_v61 = vpop.f32.mrb[19].mxu0  ;;  %v905_v63 = vmul.f32 -1.442695, %v488_v58 }
 0xbe2   :  { %1081 = vpow2.f32 %v905_v63 }
 0xbea   :  { %v1080_v62 = vpop.eup %1079 }
 0xbeb   :  { %498 = vrot.lane.b32.xlu0 %v1080_v62, %s1122_s1 }
 0xbec   :  { %v1082_v1 = vpop.eup %1081 }
 0xbed   :  { %v492_v2 = vadd.f32 1.0, %v1082_v1  ;;  %v912_v1 = vmul.f32 -1.442695, %v1273_v55 }
 0xbef   :  { %1083 = vrcp.f32 %v492_v2 }
 0xbf9   :  { %v1084_v3 = vpop.eup %1083 }
 0xbfa   :  { %v496_v9 = vmul.f32 %v1084_v3, %v434_v38 }
 0xc5d   :  { %v499_v4 = vpop.permute.xlu0 %498 }
 0xc5e   :  { %v501_v7 = vmul.f32 %v1084_v3, %v499_v4 }
 0xc60   :  { %503 = vrot.lane.b32.xlu1 %v501_v7, %s1123_s2 }
 0xcd2   :  { %v504_v10 = vpop.permute.xlu1 %503 }
 0xcd3   :  { %v506_v11 = vadd.f32 %v504_v10, %v496_v9 }
 0xcd5   :  { %1085 = vtanh.f32 %v506_v11 }
 0xcdf   :  { %v1086_v12 = vpop.eup %1085 }
 0xce0   :  { %509 = vrot.lane.b32.xlu0 %v1086_v12, %s1122_s1 }
 0xd52   :  { %v510_v13 = vpop.permute.xlu0 %509 }
 0xd53   :  { %v512_v14 = vmul.f32 %v1084_v3, %v510_v13 }
 0xd55   :  { %v513_v15 = vpack.c.bf16 %v512_v14, %v512_v14 }
 0xd57   :  { %515 = vrot.lane.b32.xlu1 %v513_v15, %s1123_s2 }
 0xdc9   :  { %v516_v16 = vpop.permute.xlu1 %515 }
 0xdca   :  { %995 = vmatmul.mubr.msk.bf16.vlgmr.msra.gmra.mrb[16].mxu1 %vm156_vm3, %v516_v16 }
 0xdcb   :  { %1007 = vmatpush3.bf16.msra.mxu1 %v1173_v6  ;;  %1010 = vmatprep.mubr.msk.bf16.mxu1 %vm1120_vm0, %v1119_v0 }
 0xdcc   :  { %1008 = vmatprep.subr.bf16.mxu1 %v1119_v0 }
 0xdcf   :  { %1009 = vmatpush3.bf16.msra.mxu1 %v1182_v8 }
 0xdd0   :  { %1022 = vmatprep.subr.bf16.mxu1 %v1119_v0 }
 0xe9d   :  { %v554_v17 = vpop.f32.mrb[16].mxu1 }
 0xe9e   :  { %v560_v18 = vadd.f32 %v554_v17, %v127_v50  ;;  %v996_v19 = vpop.f32.mrb[17].mxu1 }
 0xe9f   :  { %v557_v20 = vpop.f32.mrb[18].mxu1  ;;  %v1045_v19 = vld [vmem:[%s1343_s3] sm:$0xff]  }
 0xea0   :  { %1087 = vtanh.f32 %v560_v18  ;;  %v997_v21 = vpop.f32.mrb[19].mxu1  ;;  %v907_v23 = vmul.f32 -1.442695, %v560_v18  ;;  %v1044_v18 = vld [vmem:[%s1342_s4 + $0x8] sm:$0xff]  }
 0xea1   :  { %v1046_v20 = vld [vmem:[%s1343_s3 + $0x8] sm:$0xff]  }
 0xea2   :  { %1089 = vpow2.f32 %v907_v23 }
 0xeaa   :  { %v1088_v22 = vpop.eup %1087 }
 0xeab   :  { %570 = vrot.lane.b32.xlu0 %v1088_v22, %s1122_s1 }
 0xeac   :  { %v1090_v6 = vpop.eup %1089 }
 0xead   :  { %v564_v24 = vadd.f32 1.0, %v1090_v6 }
 0xeaf   :  { %1091 = vrcp.f32 %v564_v24 }
 0xeb9   :  { %v1092_v25 = vpop.eup %1091 }
 0xeba   :  { %v568_v8 = vmul.f32 %v1092_v25, %v506_v11 }
 0xf1d   :  { %v571_v26 = vpop.permute.xlu0 %570 }
 0xf1e   :  { %v573_v27 = vmul.f32 %v1092_v25, %v571_v26 }
 0xf20   :  { %575 = vrot.lane.b32.xlu1 %v573_v27, %s1123_s2 }
 0xf92   :  { %v576_v28 = vpop.permute.xlu1 %575 }
 0xf93   :  { %v578_v29 = vadd.f32 %v576_v28, %v568_v8 }
 0xf95   :  { %1093 = vtanh.f32 %v578_v29 }
 0xf9f   :  { %v1094_v30 = vpop.eup %1093 }
 0xfa0   :  { %581 = vrot.lane.b32.xlu0 %v1094_v30, %s1122_s1 }
0x1012   :  { %v582_v31 = vpop.permute.xlu0 %581 }
0x1013   :  { %v584_v32 = vmul.f32 %v1092_v25, %v582_v31 }
0x1015   :  { %v585_v33 = vpack.c.bf16 %v584_v32, %v584_v32  ;;  %v919_v32 = vld [vmem:[%s1344_s5] ss:$0 sm:$0xff] }
0x1017   :  { %587 = vrot.lane.b32.xlu1 %v585_v33, %s1123_s2 }
0x1089   :  { %v588_v34 = vpop.permute.xlu1 %587 }
0x108a   :  { %1003 = vmatmul.mubr.msk.bf16.vlgmr.msra.gmra.mrb[20].mxu0 %vm156_vm3, %v588_v34 }
0x108b   :  { %1018 = vmatprep.mubr.msk.bf16.mxu0 %vm1120_vm0, %v1119_v0 }
0x115d   :  { %v626_v35 = vpop.f32.mrb[20].mxu0 }
0x115e   :  { %v632_v36 = vadd.f32 %v626_v35, %v1269_v52  ;;  %v1004_v37 = vpop.f32.mrb[21].mxu0 }
0x115f   :  { %v629_v38 = vpop.f32.mrb[22].mxu0 }
0x1160   :  { %1095 = vtanh.f32 %v632_v36  ;;  %v1005_v39 = vpop.f32.mrb[23].mxu0  ;;  %v909_v41 = vmul.f32 -1.442695, %v632_v36 }
0x1162   :  { %1097 = vpow2.f32 %v909_v41 }
0x116a   :  { %v1096_v40 = vpop.eup %1095 }
0x116b   :  { %642 = vrot.lane.b32.xlu0 %v1096_v40, %s1122_s1 }
0x116c   :  { %v1098_v42 = vpop.eup %1097 }
0x116d   :  { %v636_v43 = vadd.f32 1.0, %v1098_v42 }
0x116f   :  { %1099 = vrcp.f32 %v636_v43 }
0x1179   :  { %v1100_v44 = vpop.eup %1099 }
0x117a   :  { %v640_v47 = vmul.f32 %v1100_v44, %v578_v29 }
0x11dd   :  { %v643_v45 = vpop.permute.xlu0 %642 }
0x11de   :  { %v645_v46 = vmul.f32 %v1100_v44, %v643_v45 }
0x11e0   :  { %647 = vrot.lane.b32.xlu1 %v645_v46, %s1123_s2 }
0x1252   :  { %v648_v5 = vpop.permute.xlu1 %647 }
0x1253   :  { %v650_v48 = vadd.f32 %v648_v5, %v640_v47 }
0x1255   :  { %1101 = vtanh.f32 %v650_v48 }
0x125f   :  { %v1102_v49 = vpop.eup %1101 }
0x1260   :  { %653 = vrot.lane.b32.xlu0 %v1102_v49, %s1122_s1 }
0x12d2   :  { %v654_v50 = vpop.permute.xlu0 %653 }
0x12d3   :  { %v656_v51 = vmul.f32 %v1100_v44, %v654_v50 }
0x12d5   :  { %v657_v52 = vpack.c.bf16 %v656_v51, %v656_v51 }
0x12d7   :  { %659 = vrot.lane.b32.xlu1 %v657_v52, %s1123_s2 }
0x1349   :  { %v660_v53 = vpop.permute.xlu1 %659 }
0x134a   :  { %1011 = vmatmul.mubr.msk.bf16.vlgmr.msra.gmra.mrb[20].mxu1 %vm156_vm3, %v660_v53 }
0x134b   :  { %1026 = vmatprep.mubr.msk.bf16.mxu1 %vm1120_vm0, %v1119_v0  ;;  %1023 = vmatpush3.bf16.msra.mxu1 %v1045_v19 }
0x134c   :  { %1024 = vmatprep.subr.bf16.mxu1 %v1119_v0 }
0x134f   :  { %1025 = vmatpush3.bf16.msra.mxu1 %v1046_v20 }
0x141d   :  { %v698_v56 = vpop.f32.mrb[20].mxu1 }
0x141e   :  { %v704_v57 = vadd.f32 %v698_v56, %v1271_v54  ;;  %v1012_v58 = vpop.f32.mrb[21].mxu1 }
0x141f   :  { %v701_v59 = vpop.f32.mrb[22].mxu1 }
0x1420   :  { %1103 = vtanh.f32 %v704_v57  ;;  %v1013_v60 = vpop.f32.mrb[23].mxu1  ;;  %v911_v63 = vmul.f32 -1.442695, %v704_v57 }
0x1421   :  { %1105 = vtanh.f32 %v1273_v55  ;;  %v1043_v55 = vld [vmem:[%s1342_s4] sm:$0xff]  }
0x1422   :  { %1107 = vpow2.f32 %v911_v63  ;;  %1015 = vmatpush3.bf16.msra.mxu0 %v1043_v55 }
0x1423   :  { %1109 = vpow2.f32 %v912_v1  ;;  %1016 = vmatprep.subr.bf16.mxu0 %v1119_v0 }
0x1426   :  { %1017 = vmatpush3.bf16.msra.mxu0 %v1044_v18 }
0x142a   :  { %v1104_v61 = vpop.eup %1103 }
0x142b   :  { %714 = vrot.lane.b32.xlu0 %v1104_v61, %s1122_s1  ;;  %v1106_v62 = vpop.eup %1105 }
0x142c   :  { %v1108_v2 = vpop.eup %1107 }
0x142d   :  { %v708_v3 = vadd.f32 1.0, %v1108_v2  ;;  %v1110_v54 = vpop.eup %1109 }
0x142e   :  { %v732_v4 = vadd.f32 1.0, %v1110_v54 }
0x142f   :  { %737 = vrot.lane.b32.xlu0 %v1106_v62, %s1122_s1  ;;  %1111 = vrcp.f32 %v708_v3 }
0x1430   :  { %1113 = vrcp.f32 %v732_v4 }
0x1439   :  { %v1112_v7 = vpop.eup %1111 }
0x143a   :  { %v1114_v11 = vpop.eup %1113  ;;  %v712_v15 = vmul.f32 %v1112_v7, %v650_v48 }
0x149d   :  { %v715_v9 = vpop.permute.xlu0 %714 }
0x149e   :  { %v717_v10 = vmul.f32 %v1112_v7, %v715_v9 }
0x14a0   :  { %719 = vrot.lane.b32.xlu1 %v717_v10, %s1123_s2 }
0x14a1   :  { %v738_v12 = vpop.permute.xlu0 %737 }
0x14a2   :  { %v740_v13 = vmul.f32 %v1114_v11, %v738_v12 }
0x14a4   :  { %1115 = vtanh.f32 %v740_v13 }
0x14ae   :  { %v1116_v14 = vpop.eup %1115 }
0x14af   :  { %743 = vrot.lane.b32.xlu0 %v1116_v14, %s1124_s24 }
0x1512   :  { %v720_v16 = vpop.permute.xlu1 %719 }
0x1513   :  { %v722_v17 = vadd.f32 %v720_v16, %v712_v15 }
0x1515   :  { %1117 = vtanh.f32 %v722_v17 }
0x151f   :  { %v1118_v21 = vpop.eup %1117 }
0x1520   :  { %725 = vrot.lane.b32.xlu1 %v1118_v21, %s1122_s1 }
0x1521   :  { %v744_v22 = vpop.permute.xlu0 %743 }
0x1522   :  { %v746_v23 = vmul.f32 %v1114_v11, %v744_v22 }
0x1524   :  { %v752_v6 = vpack.c.bf16 %v746_v23, %v746_v23 }
0x1526   :  { %758 = vrot.lane.b32.xlu1 %v752_v6, %s1123_s2 }
0x1592   :  { %v726_v24 = vpop.permute.xlu1 %725 }
0x1593   :  { %v728_v25 = vmul.f32 %v1112_v7, %v726_v24 }
0x1595   :  { %v747_v26 = vpack.c.bf16 %v728_v25, %v728_v25 }
0x1597   :  { %816 = vrot.lane.b32.xlu0 %v747_v26, %s1123_s2 }
0x1598   :  { %v759_v27 = vpop.permute.xlu1 %758 }
0x1599   :  { %1019 = vmatmul.mubr.msk.bf16.vlgmr.msra.gmra.mrb[24].mxu0 %vm156_vm3, %v759_v27 }
0x1609   :  { %v817_v8 = vpop.permute.xlu0 %816 }
0x160a   :  { %1027 = vmatmul.mubr.msk.bf16.vlgmr.msra.gmra.mrb[24].mxu1 %vm156_vm3, %v817_v8 }
0x166c   :  { %v809_v0 = vpop.f32.mrb[24].mxu0 }
0x166d   :  { %v1020_v28 = vpop.f32.mrb[25].mxu0 }
0x166e   :  { %v812_v29 = vpop.f32.mrb[26].mxu0 }
0x166f   :  { %v1021_v30 = vpop.f32.mrb[27].mxu0 }
0x16dd   :  { %v867_v31 = vpop.f32.mrb[24].mxu1 }
0x16de   :  { %v868_v33 = vadd.f32 %v867_v31, %v809_v0  ;;  %v1028_v34 = vpop.f32.mrb[25].mxu1 }
0x16df   :  { %v870_v35 = vpop.f32.mrb[26].mxu1 }
0x16e0   :  { %v880_v36 = vadd.f32 %v919_v32, %v868_v33  ;;  %v1029_v37 = vpop.f32.mrb[27].mxu1 }
0x16e2   :  { %881 = vst [vmem:[%s1345_s6] sm:$0xff] %v880_v36 }

</bundles_post_ra>
